<compile_context>
chip_gen: v5e
topology: v5e:2x2
jax: 0.10.0
libtpu: 0.0.40
codegen_flags: <defaults>
</compile_context>

<pallas_src>
import functools

import jax
import jax.numpy as jnp
from jax import lax
from jax.experimental import pallas as pl
from jax.experimental.pallas import tpu as pltpu

_PAD = 128  # lane-aligned zero halo on each side of the flattened H*W axis


def one_conv_kernel(x_ref, w1_ref, b1_ref, alpha_ref, w2_ref, b2_ref, mask_ref,
                    s1_ref, s2_ref, out_ref,
                    pad_ref, col_ref, *, width, relu):
    # x_ref    : (1, Cin, H*W)           input, channel-major, spatial on lanes
    # w1_ref   : (G, 9*Cin)              conv  weights, tap-major ((ky*3+kx)*Cin + c)
    # b1_ref   : (G, 1)
    # alpha_ref: (G, 1)                  PReLU per-channel slope
    # w2_ref   : (Cin, 9*G)              conv1 weights, tap-major
    # b2_ref   : (Cin, 1)
    # mask_ref : (2, H*W)                column-wrap masks (row0: kx=0, row1: kx=2)
    # s1/s2    : (1, 1) SMEM             Scale parameters (weight1 / weight2)
    # out_ref  : (1, Cin, H*W)           lane-dense output
    # pad_ref  : (Cmax, H*W + 2*_PAD)    shared zero-haloed flattened buffer (VMEM)
    # col_ref  : (9*Cmax, H*W)           shared tap-fused im2col buffer     (VMEM)
    C = x_ref.shape[1]
    HW = x_ref.shape[2]
    Cmax = pad_ref.shape[0]

    mask_l = mask_ref[0:1, :]          # zero where x-col == 0        (kx == 0 taps)
    mask_r = mask_ref[1:2, :]          # zero where x-col == width-1  (kx == 2 taps)

    # Zero only the two lane-aligned halos, once per body.  Interior stores below
    # never touch them, so both convs see a valid zero halo.
    zeros = jnp.zeros((Cmax, _PAD), jnp.float32)
    pad_ref[:, 0:_PAD] = zeros
    pad_ref[:, _PAD + HW:] = zeros

    def conv3x3(src, w_ref, b_ref, nchan):
        """3x3 conv, padding=1, as one tap-fused MXU matmul (K = 9*nchan)."""
        # write the interior of the haloed buffer exactly once
        pad_ref[0:nchan, _PAD:_PAD + HW] = src.astype(jnp.float32)
        # tap-fused im2col: 9 statically lane-shifted slices on sublane-aligned rows
        for ky in range(3):
            for kx in range(3):
                t = ky * 3 + kx
                start = _PAD - width - 1 + ky * width + kx      # static offset
                patch = pad_ref[0:nchan, start:start + HW]      # (nchan, H*W)
                if kx == 0:
                    patch = patch * mask_l
                elif kx == 2:
                    patch = patch * mask_r
                col_ref[t * nchan:(t + 1) * nchan, :] = patch
        acc = jnp.dot(w_ref[...], col_ref[0:9 * nchan, :],
                      preferred_element_type=jnp.float32)       # (out_ch, H*W)
        return acc + b_ref[...]

    x = x_ref[0]                                                # (Cin, H*W)

    # ---- conv (Cin -> G) ----
    h = conv3x3(x, w1_ref, b1_ref, C)
    # ---- PReLU (per output channel, channels on sublanes) ----
    if relu:
        h = jnp.where(h > 0, h, h * alpha_ref[...])
    # ---- conv1 (G -> Cin) ----
    y = conv3x3(h, w2_ref, b2_ref, h.shape[0])

    # ---- output = weight1 * x + weight2 * conv1(prelu(conv(x))) ----
    out = s1_ref[0, 0] * x.astype(jnp.float32) + s2_ref[0, 0] * y
    out_ref[0] = out.astype(out_ref.dtype)                      # full-lane stores


@functools.partial(jax.jit, static_argnames=("relu",))
def one_conv_forward(x_nchw, w1, b1, alpha, w2, b2, s1, s2, *, relu=True):
    """x_nchw: (B, Cin, H, W). w1: (G, Cin, 3, 3). w2: (Cin, G, 3, 3)."""
    B, C, H, W = x_nchw.shape
    G = w1.shape[0]
    HW = H * W
    Cmax = max(C, G)
    assert W + 1 <= _PAD, "row width must fit inside the lane-aligned halo"
    # TODO(synk): for production-size H, W add spatial (row-halo) tiling so the
    # per-batch VMEM footprint stays bounded (v7x has 64 MiB VMEM).

    x_flat = x_nchw.reshape(B, C, HW)               # pure metadata, no transpose

    # OIHW -> (out, 9*in), tap-major to match the im2col row layout
    w1s = jnp.transpose(w1, (0, 2, 3, 1)).reshape(G, 9 * C)
    w2s = jnp.transpose(w2, (0, 2, 3, 1)).reshape(C, 9 * G)

    # column-wrap masks for the flattened-shift trick (kx=0 / kx=2 taps)
    col = jnp.arange(HW, dtype=jnp.int32) % W
    masks = jnp.stack([col != 0, col != W - 1]).astype(jnp.float32)   # (2, HW)

    kernel = functools.partial(one_conv_kernel, width=W, relu=relu)

    out_flat = pl.pallas_call(
        kernel,
        out_shape=jax.ShapeDtypeStruct((B, C, HW), x_nchw.dtype),
        grid_spec=pltpu.PrefetchScalarGridSpec(
            num_scalar_prefetch=0,
            grid=(B,),
            in_specs=[
                pl.BlockSpec((1, C, HW), lambda b: (b, 0, 0)),
                pl.BlockSpec((G, 9 * C), lambda b: (0, 0)),
                pl.BlockSpec((G, 1), lambda b: (0, 0)),
                pl.BlockSpec((G, 1), lambda b: (0, 0)),
                pl.BlockSpec((C, 9 * G), lambda b: (0, 0)),
                pl.BlockSpec((C, 1), lambda b: (0, 0)),
                pl.BlockSpec((2, HW), lambda b: (0, 0)),
                pl.BlockSpec(memory_space=pltpu.MemorySpace.SMEM),
                pl.BlockSpec(memory_space=pltpu.MemorySpace.SMEM),
            ],
            out_specs=pl.BlockSpec((1, C, HW), lambda b: (b, 0, 0)),
            scratch_shapes=[
                pltpu.VMEM((Cmax, HW + 2 * _PAD), jnp.float32),   # shared halo buf
                pltpu.VMEM((9 * Cmax, HW), jnp.float32),          # shared im2col
            ],
        ),
        # batch axis is independent -> shard it across the 2 TensorCores (v7x)
        compiler_params=pltpu.CompilerParams(
            dimension_semantics=("parallel",)),
    )(x_flat, w1s, b1.reshape(G, 1), alpha.reshape(G, 1), w2s,
      b2.reshape(C, 1), masks, s1.reshape(1, 1), s2.reshape(1, 1))

    return out_flat.reshape(B, C, H, W)


def ref_forward(x, w1, b1, alpha, w2, b2, s1, s2):
    """Pure-JAX reference mirroring the PyTorch forward (NCHW, relu=True)."""
    y = lax.conv_general_dilated(x, w1, (1, 1), 'SAME',
                                 dimension_numbers=('NCHW', 'OIHW', 'NCHW'))
    y = y + b1.reshape(1, -1, 1, 1)
    y = jnp.where(y > 0, y, y * alpha.reshape(1, -1, 1, 1))      # PReLU
    z = lax.conv_general_dilated(y, w2, (1, 1), 'SAME',
                                 dimension_numbers=('NCHW', 'OIHW', 'NCHW'))
    z = z + b2.reshape(1, -1, 1, 1)
    return s1 * x + s2 * z


if __name__ == "__main__":
    key = jax.random.PRNGKey(0)
    B, C, H, W = 2, 8, 16, 16      # inchanels = 8
    G = 16                         # growth_rate = 16
    k0, k1, k2, k3, k4 = jax.random.split(key, 5)

    x = jax.random.normal(k0, (B, C, H, W), jnp.float32)

    # deterministic synthetic parameters (module __init__ shapes)
    w1 = jax.random.normal(k1, (G, C, 3, 3), jnp.float32) * 0.1   # conv
    b1 = jax.random.normal(k2, (G,), jnp.float32) * 0.1
    alpha = jnp.full((G,), 0.25, jnp.float32)                     # PReLU default
    w2 = jax.random.normal(k3, (C, G, 3, 3), jnp.float32) * 0.1   # conv1
    b2 = jax.random.normal(k4, (C,), jnp.float32) * 0.1
    s1 = jnp.array(0.9, jnp.float32)                              # Scale (weight1)
    s2 = jnp.array(1.1, jnp.float32)                              # Scale (weight2)
    # TODO(synk): weight_norm (the wn lambda) is constructed but never applied to
    # conv/conv1 in the PyTorch module, so it is intentionally omitted here.

    out = jax.block_until_ready(one_conv_forward(x, w1, b1, alpha, w2, b2, s1, s2))

    ref = ref_forward(x, w1, b1, alpha, w2, b2, s1, s2)
    assert out.shape == (B, C, H, W)
    err = jnp.max(jnp.abs(out - ref))
    assert jnp.allclose(out, ref, atol=1e-4, rtol=1e-4), f"max abs err {err}"
    print("KERNEL_OK")
</pallas_src>

<mosaic_0001>
module attributes {stable_mosaic.version = 11 : i64} {
  func.func @one_conv_kernel(%arg0: i32, %arg1: memref<1x8x256xf32, #tpu.memory_space<vmem>>, %arg2: memref<16x72xf32, #tpu.memory_space<vmem>>, %arg3: memref<16x1xf32, #tpu.memory_space<vmem>>, %arg4: memref<16x1xf32, #tpu.memory_space<vmem>>, %arg5: memref<8x144xf32, #tpu.memory_space<vmem>>, %arg6: memref<8x1xf32, #tpu.memory_space<vmem>>, %arg7: memref<2x256xf32, #tpu.memory_space<vmem>>, %arg8: memref<1x1xf32, #tpu.memory_space<smem>>, %arg9: memref<1x1xf32, #tpu.memory_space<smem>>, %arg10: memref<1x8x256xf32, #tpu.memory_space<vmem>>, %arg11: memref<16x512xf32, #tpu.memory_space<vmem>>, %arg12: memref<144x256xf32, #tpu.memory_space<vmem>>) attributes {dimension_semantics = [#tpu.dimension_semantics<parallel>], iteration_bounds = array<i64: 2>, scalar_prefetch = 0 : i64, scratch_operands = 2 : i64, tpu.core_type = #tpu.core_type<tc>, window_params = [{transform_indices = @transform_0, window_bounds = array<i64: 1, 8, 256>}, {pipeline_mode = #tpu.pipeline_mode<synchronous>, transform_indices = @transform_1, window_bounds = array<i64: 16, 72>}, {pipeline_mode = #tpu.pipeline_mode<synchronous>, transform_indices = @transform_2, window_bounds = array<i64: 16, 1>}, {pipeline_mode = #tpu.pipeline_mode<synchronous>, transform_indices = @transform_3, window_bounds = array<i64: 16, 1>}, {pipeline_mode = #tpu.pipeline_mode<synchronous>, transform_indices = @transform_4, window_bounds = array<i64: 8, 144>}, {pipeline_mode = #tpu.pipeline_mode<synchronous>, transform_indices = @transform_5, window_bounds = array<i64: 8, 1>}, {pipeline_mode = #tpu.pipeline_mode<synchronous>, transform_indices = @transform_6, window_bounds = array<i64: 2, 256>}, {transform_indices = @transform_7, window_bounds = array<i64: 1, 1>}, {transform_indices = @transform_8, window_bounds = array<i64: 1, 1>}, {transform_indices = @transform_9, window_bounds = array<i64: 1, 8, 256>}]} {
    %c0 = arith.constant 0 : index
    %c0_0 = arith.constant 0 : index
    %0 = vector.load %arg7[%c0, %c0_0] : memref<2x256xf32, #tpu.memory_space<vmem>>, vector<1x256xf32>
    %c1 = arith.constant 1 : index
    %c0_1 = arith.constant 0 : index
    %1 = vector.load %arg7[%c1, %c0_1] : memref<2x256xf32, #tpu.memory_space<vmem>>, vector<1x256xf32>
    %cst = arith.constant 0.000000e+00 : f32
    %2 = vector.broadcast %cst : f32 to vector<16x128xf32>
    %c0_2 = arith.constant 0 : index
    %c0_3 = arith.constant 0 : index
    %3 = vector.load %arg11[%c0_2, %c0_3] : memref<16x512xf32, #tpu.memory_space<vmem>>, vector<16x128xf32>
    tpu.vector_store %arg11[%c0_2, %c0_3], %2 {strides = array<i32>} : memref<16x512xf32, #tpu.memory_space<vmem>>, vector<16x128xf32>,
    %c0_4 = arith.constant 0 : index
    %c384 = arith.constant 384 : index
    %4 = vector.load %arg11[%c0_4, %c384] : memref<16x512xf32, #tpu.memory_space<vmem>>, vector<16x128xf32>
    tpu.vector_store %arg11[%c0_4, %c384], %2 {strides = array<i32>} : memref<16x512xf32, #tpu.memory_space<vmem>>, vector<16x128xf32>,
    %c0_5 = arith.constant 0 : index
    %c0_6 = arith.constant 0 : index
    %c0_7 = arith.constant 0 : index
    %5 = vector.load %arg1[%c0_5, %c0_6, %c0_7] : memref<1x8x256xf32, #tpu.memory_space<vmem>>, vector<1x8x256xf32>
    %6 = vector.shape_cast %5 : vector<1x8x256xf32> to vector<8x256xf32>
    %c0_8 = arith.constant 0 : index
    %c128 = arith.constant 128 : index
    %7 = vector.load %arg11[%c0_8, %c128] : memref<16x512xf32, #tpu.memory_space<vmem>>, vector<8x256xf32>
    tpu.vector_store %arg11[%c0_8, %c128], %6 {strides = array<i32>} : memref<16x512xf32, #tpu.memory_space<vmem>>, vector<8x256xf32>,
    %c0_9 = arith.constant 0 : index
    %c111 = arith.constant 111 : index
    %8 = vector.load %arg11[%c0_9, %c111] : memref<16x512xf32, #tpu.memory_space<vmem>>, vector<8x256xf32>
    %9 = vector.broadcast %0 : vector<1x256xf32> to vector<8x256xf32>
    %10 = arith.mulf %8, %9 : vector<8x256xf32>
    %c0_10 = arith.constant 0 : index
    %c0_11 = arith.constant 0 : index
    %11 = vector.load %arg12[%c0_10, %c0_11] : memref<144x256xf32, #tpu.memory_space<vmem>>, vector<8x256xf32>
    tpu.vector_store %arg12[%c0_10, %c0_11], %10 {strides = array<i32>} : memref<144x256xf32, #tpu.memory_space<vmem>>, vector<8x256xf32>,
    %c0_12 = arith.constant 0 : index
    %c112 = arith.constant 112 : index
    %12 = vector.load %arg11[%c0_12, %c112] : memref<16x512xf32, #tpu.memory_space<vmem>>, vector<8x256xf32>
    %c8 = arith.constant 8 : index
    %c0_13 = arith.constant 0 : index
    %13 = vector.load %arg12[%c8, %c0_13] : memref<144x256xf32, #tpu.memory_space<vmem>>, vector<8x256xf32>
    tpu.vector_store %arg12[%c8, %c0_13], %12 {strides = array<i32>} : memref<144x256xf32, #tpu.memory_space<vmem>>, vector<8x256xf32>,
    %c0_14 = arith.constant 0 : index
    %c113 = arith.constant 113 : index
    %14 = vector.load %arg11[%c0_14, %c113] : memref<16x512xf32, #tpu.memory_space<vmem>>, vector<8x256xf32>
    %15 = vector.broadcast %1 : vector<1x256xf32> to vector<8x256xf32>
    %16 = arith.mulf %14, %15 : vector<8x256xf32>
    %c16 = arith.constant 16 : index
    %c0_15 = arith.constant 0 : index
    %17 = vector.load %arg12[%c16, %c0_15] : memref<144x256xf32, #tpu.memory_space<vmem>>, vector<8x256xf32>
    tpu.vector_store %arg12[%c16, %c0_15], %16 {strides = array<i32>} : memref<144x256xf32, #tpu.memory_space<vmem>>, vector<8x256xf32>,
    %c0_16 = arith.constant 0 : index
    %c127 = arith.constant 127 : index
    %18 = vector.load %arg11[%c0_16, %c127] : memref<16x512xf32, #tpu.memory_space<vmem>>, vector<8x256xf32>
    %19 = vector.broadcast %0 : vector<1x256xf32> to vector<8x256xf32>
    %20 = arith.mulf %18, %19 : vector<8x256xf32>
    %c24 = arith.constant 24 : index
    %c0_17 = arith.constant 0 : index
    %21 = vector.load %arg12[%c24, %c0_17] : memref<144x256xf32, #tpu.memory_space<vmem>>, vector<8x256xf32>
    tpu.vector_store %arg12[%c24, %c0_17], %20 {strides = array<i32>} : memref<144x256xf32, #tpu.memory_space<vmem>>, vector<8x256xf32>,
    %c0_18 = arith.constant 0 : index
    %c128_19 = arith.constant 128 : index
    %22 = vector.load %arg11[%c0_18, %c128_19] : memref<16x512xf32, #tpu.memory_space<vmem>>, vector<8x256xf32>
    %c32 = arith.constant 32 : index
    %c0_20 = arith.constant 0 : index
    %23 = vector.load %arg12[%c32, %c0_20] : memref<144x256xf32, #tpu.memory_space<vmem>>, vector<8x256xf32>
    tpu.vector_store %arg12[%c32, %c0_20], %22 {strides = array<i32>} : memref<144x256xf32, #tpu.memory_space<vmem>>, vector<8x256xf32>,
    %c0_21 = arith.constant 0 : index
    %c129 = arith.constant 129 : index
    %24 = vector.load %arg11[%c0_21, %c129] : memref<16x512xf32, #tpu.memory_space<vmem>>, vector<8x256xf32>
    %25 = vector.broadcast %1 : vector<1x256xf32> to vector<8x256xf32>
    %26 = arith.mulf %24, %25 : vector<8x256xf32>
    %c40 = arith.constant 40 : index
    %c0_22 = arith.constant 0 : index
    %27 = vector.load %arg12[%c40, %c0_22] : memref<144x256xf32, #tpu.memory_space<vmem>>, vector<8x256xf32>
    tpu.vector_store %arg12[%c40, %c0_22], %26 {strides = array<i32>} : memref<144x256xf32, #tpu.memory_space<vmem>>, vector<8x256xf32>,
    %c0_23 = arith.constant 0 : index
    %c143 = arith.constant 143 : index
    %28 = vector.load %arg11[%c0_23, %c143] : memref<16x512xf32, #tpu.memory_space<vmem>>, vector<8x256xf32>
    %29 = vector.broadcast %0 : vector<1x256xf32> to vector<8x256xf32>
    %30 = arith.mulf %28, %29 : vector<8x256xf32>
    %c48 = arith.constant 48 : index
    %c0_24 = arith.constant 0 : index
    %31 = vector.load %arg12[%c48, %c0_24] : memref<144x256xf32, #tpu.memory_space<vmem>>, vector<8x256xf32>
    tpu.vector_store %arg12[%c48, %c0_24], %30 {strides = array<i32>} : memref<144x256xf32, #tpu.memory_space<vmem>>, vector<8x256xf32>,
    %c0_25 = arith.constant 0 : index
    %c144 = arith.constant 144 : index
    %32 = vector.load %arg11[%c0_25, %c144] : memref<16x512xf32, #tpu.memory_space<vmem>>, vector<8x256xf32>
    %c56 = arith.constant 56 : index
    %c0_26 = arith.constant 0 : index
    %33 = vector.load %arg12[%c56, %c0_26] : memref<144x256xf32, #tpu.memory_space<vmem>>, vector<8x256xf32>
    tpu.vector_store %arg12[%c56, %c0_26], %32 {strides = array<i32>} : memref<144x256xf32, #tpu.memory_space<vmem>>, vector<8x256xf32>,
    %c0_27 = arith.constant 0 : index
    %c145 = arith.constant 145 : index
    %34 = vector.load %arg11[%c0_27, %c145] : memref<16x512xf32, #tpu.memory_space<vmem>>, vector<8x256xf32>
    %35 = vector.broadcast %1 : vector<1x256xf32> to vector<8x256xf32>
    %36 = arith.mulf %34, %35 : vector<8x256xf32>
    %c64 = arith.constant 64 : index
    %c0_28 = arith.constant 0 : index
    %37 = vector.load %arg12[%c64, %c0_28] : memref<144x256xf32, #tpu.memory_space<vmem>>, vector<8x256xf32>
    tpu.vector_store %arg12[%c64, %c0_28], %36 {strides = array<i32>} : memref<144x256xf32, #tpu.memory_space<vmem>>, vector<8x256xf32>,
    %c0_29 = arith.constant 0 : index
    %c0_30 = arith.constant 0 : index
    %38 = vector.load %arg2[%c0_29, %c0_30] : memref<16x72xf32, #tpu.memory_space<vmem>>, vector<16x72xf32>
    %c0_31 = arith.constant 0 : index
    %c0_32 = arith.constant 0 : index
    %39 = vector.load %arg12[%c0_31, %c0_32] : memref<144x256xf32, #tpu.memory_space<vmem>>, vector<72x256xf32>
    %cst_33 = arith.constant dense<0.000000e+00> : vector<16x256xf32>
    %40 = tpu.matmul %38, %39, %cst_33 {dimension_numbers = #tpu.dot_dimension_numbers<[1], [0], [0], [1], [0, 0, 1, 1], [], []>} : vector<16x72xf32>, vector<72x256xf32>, vector<16x256xf32> -> vector<16x256xf32>
    %c0_34 = arith.constant 0 : index
    %c0_35 = arith.constant 0 : index
    %41 = vector.load %arg3[%c0_34, %c0_35] : memref<16x1xf32, #tpu.memory_space<vmem>>, vector<16x1xf32>
    %42 = vector.broadcast %41 : vector<16x1xf32> to vector<16x256xf32>
    %43 = arith.addf %40, %42 : vector<16x256xf32>
    %cst_36 = arith.constant 0.000000e+00 : f32
    %44 = vector.broadcast %cst_36 : f32 to vector<16x256xf32>
    %45 = arith.cmpf ogt, %43, %44 : vector<16x256xf32>
    %c0_37 = arith.constant 0 : index
    %c0_38 = arith.constant 0 : index
    %46 = vector.load %arg4[%c0_37, %c0_38] : memref<16x1xf32, #tpu.memory_space<vmem>>, vector<16x1xf32>
    %47 = vector.broadcast %46 : vector<16x1xf32> to vector<16x256xf32>
    %48 = arith.mulf %43, %47 : vector<16x256xf32>
    %49 = arith.select %45, %43, %48 : vector<16x256xi1>, vector<16x256xf32>
    %c0_39 = arith.constant 0 : index
    %c128_40 = arith.constant 128 : index
    %50 = vector.load %arg11[%c0_39, %c128_40] : memref<16x512xf32, #tpu.memory_space<vmem>>, vector<16x256xf32>
    tpu.vector_store %arg11[%c0_39, %c128_40], %49 {strides = array<i32>} : memref<16x512xf32, #tpu.memory_space<vmem>>, vector<16x256xf32>,
    %c0_41 = arith.constant 0 : index
    %c111_42 = arith.constant 111 : index
    %51 = vector.load %arg11[%c0_41, %c111_42] : memref<16x512xf32, #tpu.memory_space<vmem>>, vector<16x256xf32>
    %52 = vector.broadcast %0 : vector<1x256xf32> to vector<16x256xf32>
    %53 = arith.mulf %51, %52 : vector<16x256xf32>
    %c0_43 = arith.constant 0 : index
    %c0_44 = arith.constant 0 : index
    %54 = vector.load %arg12[%c0_43, %c0_44] : memref<144x256xf32, #tpu.memory_space<vmem>>, vector<16x256xf32>
    tpu.vector_store %arg12[%c0_43, %c0_44], %53 {strides = array<i32>} : memref<144x256xf32, #tpu.memory_space<vmem>>, vector<16x256xf32>,
    %c0_45 = arith.constant 0 : index
    %c112_46 = arith.constant 112 : index
    %55 = vector.load %arg11[%c0_45, %c112_46] : memref<16x512xf32, #tpu.memory_space<vmem>>, vector<16x256xf32>
    %c16_47 = arith.constant 16 : index
    %c0_48 = arith.constant 0 : index
    %56 = vector.load %arg12[%c16_47, %c0_48] : memref<144x256xf32, #tpu.memory_space<vmem>>, vector<16x256xf32>
    tpu.vector_store %arg12[%c16_47, %c0_48], %55 {strides = array<i32>} : memref<144x256xf32, #tpu.memory_space<vmem>>, vector<16x256xf32>,
    %c0_49 = arith.constant 0 : index
    %c113_50 = arith.constant 113 : index
    %57 = vector.load %arg11[%c0_49, %c113_50] : memref<16x512xf32, #tpu.memory_space<vmem>>, vector<16x256xf32>
    %58 = vector.broadcast %1 : vector<1x256xf32> to vector<16x256xf32>
    %59 = arith.mulf %57, %58 : vector<16x256xf32>
    %c32_51 = arith.constant 32 : index
    %c0_52 = arith.constant 0 : index
    %60 = vector.load %arg12[%c32_51, %c0_52] : memref<144x256xf32, #tpu.memory_space<vmem>>, vector<16x256xf32>
    tpu.vector_store %arg12[%c32_51, %c0_52], %59 {strides = array<i32>} : memref<144x256xf32, #tpu.memory_space<vmem>>, vector<16x256xf32>,
    %c0_53 = arith.constant 0 : index
    %c127_54 = arith.constant 127 : index
    %61 = vector.load %arg11[%c0_53, %c127_54] : memref<16x512xf32, #tpu.memory_space<vmem>>, vector<16x256xf32>
    %62 = vector.broadcast %0 : vector<1x256xf32> to vector<16x256xf32>
    %63 = arith.mulf %61, %62 : vector<16x256xf32>
    %c48_55 = arith.constant 48 : index
    %c0_56 = arith.constant 0 : index
    %64 = vector.load %arg12[%c48_55, %c0_56] : memref<144x256xf32, #tpu.memory_space<vmem>>, vector<16x256xf32>
    tpu.vector_store %arg12[%c48_55, %c0_56], %63 {strides = array<i32>} : memref<144x256xf32, #tpu.memory_space<vmem>>, vector<16x256xf32>,
    %c0_57 = arith.constant 0 : index
    %c128_58 = arith.constant 128 : index
    %65 = vector.load %arg11[%c0_57, %c128_58] : memref<16x512xf32, #tpu.memory_space<vmem>>, vector<16x256xf32>
    %c64_59 = arith.constant 64 : index
    %c0_60 = arith.constant 0 : index
    %66 = vector.load %arg12[%c64_59, %c0_60] : memref<144x256xf32, #tpu.memory_space<vmem>>, vector<16x256xf32>
    tpu.vector_store %arg12[%c64_59, %c0_60], %65 {strides = array<i32>} : memref<144x256xf32, #tpu.memory_space<vmem>>, vector<16x256xf32>,
    %c0_61 = arith.constant 0 : index
    %c129_62 = arith.constant 129 : index
    %67 = vector.load %arg11[%c0_61, %c129_62] : memref<16x512xf32, #tpu.memory_space<vmem>>, vector<16x256xf32>
    %68 = vector.broadcast %1 : vector<1x256xf32> to vector<16x256xf32>
    %69 = arith.mulf %67, %68 : vector<16x256xf32>
    %c80 = arith.constant 80 : index
    %c0_63 = arith.constant 0 : index
    %70 = vector.load %arg12[%c80, %c0_63] : memref<144x256xf32, #tpu.memory_space<vmem>>, vector<16x256xf32>
    tpu.vector_store %arg12[%c80, %c0_63], %69 {strides = array<i32>} : memref<144x256xf32, #tpu.memory_space<vmem>>, vector<16x256xf32>,
    %c0_64 = arith.constant 0 : index
    %c143_65 = arith.constant 143 : index
    %71 = vector.load %arg11[%c0_64, %c143_65] : memref<16x512xf32, #tpu.memory_space<vmem>>, vector<16x256xf32>
    %72 = vector.broadcast %0 : vector<1x256xf32> to vector<16x256xf32>
    %73 = arith.mulf %71, %72 : vector<16x256xf32>
    %c96 = arith.constant 96 : index
    %c0_66 = arith.constant 0 : index
    %74 = vector.load %arg12[%c96, %c0_66] : memref<144x256xf32, #tpu.memory_space<vmem>>, vector<16x256xf32>
    tpu.vector_store %arg12[%c96, %c0_66], %73 {strides = array<i32>} : memref<144x256xf32, #tpu.memory_space<vmem>>, vector<16x256xf32>,
    %c0_67 = arith.constant 0 : index
    %c144_68 = arith.constant 144 : index
    %75 = vector.load %arg11[%c0_67, %c144_68] : memref<16x512xf32, #tpu.memory_space<vmem>>, vector<16x256xf32>
    %c112_69 = arith.constant 112 : index
    %c0_70 = arith.constant 0 : index
    %76 = vector.load %arg12[%c112_69, %c0_70] : memref<144x256xf32, #tpu.memory_space<vmem>>, vector<16x256xf32>
    tpu.vector_store %arg12[%c112_69, %c0_70], %75 {strides = array<i32>} : memref<144x256xf32, #tpu.memory_space<vmem>>, vector<16x256xf32>,
    %c0_71 = arith.constant 0 : index
    %c145_72 = arith.constant 145 : index
    %77 = vector.load %arg11[%c0_71, %c145_72] : memref<16x512xf32, #tpu.memory_space<vmem>>, vector<16x256xf32>
    %78 = vector.broadcast %1 : vector<1x256xf32> to vector<16x256xf32>
    %79 = arith.mulf %77, %78 : vector<16x256xf32>
    %c128_73 = arith.constant 128 : index
    %c0_74 = arith.constant 0 : index
    %80 = vector.load %arg12[%c128_73, %c0_74] : memref<144x256xf32, #tpu.memory_space<vmem>>, vector<16x256xf32>
    tpu.vector_store %arg12[%c128_73, %c0_74], %79 {strides = array<i32>} : memref<144x256xf32, #tpu.memory_space<vmem>>, vector<16x256xf32>,
    %c0_75 = arith.constant 0 : index
    %c0_76 = arith.constant 0 : index
    %81 = vector.load %arg5[%c0_75, %c0_76] : memref<8x144xf32, #tpu.memory_space<vmem>>, vector<8x144xf32>
    %c0_77 = arith.constant 0 : index
    %c0_78 = arith.constant 0 : index
    %82 = vector.load %arg12[%c0_77, %c0_78] : memref<144x256xf32, #tpu.memory_space<vmem>>, vector<144x256xf32>
    %cst_79 = arith.constant dense<0.000000e+00> : vector<8x256xf32>
    %83 = tpu.matmul %81, %82, %cst_79 {dimension_numbers = #tpu.dot_dimension_numbers<[1], [0], [0], [1], [0, 0, 1, 1], [], []>} : vector<8x144xf32>, vector<144x256xf32>, vector<8x256xf32> -> vector<8x256xf32>
    %c0_80 = arith.constant 0 : index
    %c0_81 = arith.constant 0 : index
    %84 = vector.load %arg6[%c0_80, %c0_81] : memref<8x1xf32, #tpu.memory_space<vmem>>, vector<8x1xf32>
    %85 = vector.broadcast %84 : vector<8x1xf32> to vector<8x256xf32>
    %86 = arith.addf %83, %85 : vector<8x256xf32>
    %c0_82 = arith.constant 0 : index
    %c0_83 = arith.constant 0 : index
    %87 = memref.load %arg8[%c0_82, %c0_83] : memref<1x1xf32, #tpu.memory_space<smem>>
    %88 = vector.broadcast %87 : f32 to vector<8x256xf32>
    %89 = arith.mulf %88, %6 : vector<8x256xf32>
    %c0_84 = arith.constant 0 : index
    %c0_85 = arith.constant 0 : index
    %90 = memref.load %arg9[%c0_84, %c0_85] : memref<1x1xf32, #tpu.memory_space<smem>>
    %91 = vector.broadcast %90 : f32 to vector<8x256xf32>
    %92 = arith.mulf %91, %86 : vector<8x256xf32>
    %93 = arith.addf %89, %92 : vector<8x256xf32>
    %c0_86 = arith.constant 0 : index
    %c0_87 = arith.constant 0 : index
    %c0_88 = arith.constant 0 : index
    %94 = vector.load %arg10[%c0_86, %c0_87, %c0_88] : memref<1x8x256xf32, #tpu.memory_space<vmem>>, vector<1x8x256xf32>
    %95 = vector.shape_cast %94 : vector<1x8x256xf32> to vector<8x256xf32>
    %96 = vector.shape_cast %93 : vector<8x256xf32> to vector<1x8x256xf32>
    tpu.vector_store %arg10[%c0_86, %c0_87, %c0_88], %96 {strides = array<i32>} : memref<1x8x256xf32, #tpu.memory_space<vmem>>, vector<1x8x256xf32>,
    return
  }
  func.func @transform_0(%arg0: i32) -> (i32, i32, i32) {
    %c0_i32 = arith.constant 0 : i32
    %c0_i32_0 = arith.constant 0 : i32
    %c0_i32_1 = arith.constant 0 : i32
    return %arg0, %c0_i32, %c0_i32_0 : i32, i32, i32
  }
  func.func @transform_1(%arg0: i32) -> (i32, i32) {
    %c0_i32 = arith.constant 0 : i32
    %c0_i32_0 = arith.constant 0 : i32
    %c0_i32_1 = arith.constant 0 : i32
    return %c0_i32, %c0_i32_0 : i32, i32
  }
  func.func @transform_2(%arg0: i32) -> (i32, i32) {
    %c0_i32 = arith.constant 0 : i32
    %c0_i32_0 = arith.constant 0 : i32
    %c0_i32_1 = arith.constant 0 : i32
    return %c0_i32, %c0_i32_0 : i32, i32
  }
  func.func @transform_3(%arg0: i32) -> (i32, i32) {
    %c0_i32 = arith.constant 0 : i32
    %c0_i32_0 = arith.constant 0 : i32
    %c0_i32_1 = arith.constant 0 : i32
    return %c0_i32, %c0_i32_0 : i32, i32
  }
  func.func @transform_4(%arg0: i32) -> (i32, i32) {
    %c0_i32 = arith.constant 0 : i32
    %c0_i32_0 = arith.constant 0 : i32
    %c0_i32_1 = arith.constant 0 : i32
    return %c0_i32, %c0_i32_0 : i32, i32
  }
  func.func @transform_5(%arg0: i32) -> (i32, i32) {
    %c0_i32 = arith.constant 0 : i32
    %c0_i32_0 = arith.constant 0 : i32
    %c0_i32_1 = arith.constant 0 : i32
    return %c0_i32, %c0_i32_0 : i32, i32
  }
  func.func @transform_6(%arg0: i32) -> (i32, i32) {
    %c0_i32 = arith.constant 0 : i32
    %c0_i32_0 = arith.constant 0 : i32
    %c0_i32_1 = arith.constant 0 : i32
    return %c0_i32, %c0_i32_0 : i32, i32
  }
  func.func @transform_7(%arg0: i32) -> (i32, i32) {
    %c0_i32 = arith.constant 0 : i32
    %c0_i32_0 = arith.constant 0 : i32
    %c0_i32_1 = arith.constant 0 : i32
    return %c0_i32, %c0_i32_0 : i32, i32
  }
  func.func @transform_8(%arg0: i32) -> (i32, i32) {
    %c0_i32 = arith.constant 0 : i32
    %c0_i32_0 = arith.constant 0 : i32
    %c0_i32_1 = arith.constant 0 : i32
    return %c0_i32, %c0_i32_0 : i32, i32
  }
  func.func @transform_9(%arg0: i32) -> (i32, i32, i32) {
    %c0_i32 = arith.constant 0 : i32
    %c0_i32_0 = arith.constant 0 : i32
    %c0_i32_1 = arith.constant 0 : i32
    return %arg0, %c0_i32, %c0_i32_0 : i32, i32, i32
  }
}

</mosaic_0001>

<bundles_post_ra>
// kernel: one_conv_forward.1
= control target key start
LH: loop header
LB: loop body
LE: loop exit
PB: predicated region body
PF: predicated region fallthrough
CT: control target
= control target key end

     0   :  { %s1488_s13 = smov 0   ;;  %s1833_s0 = inlined_call_operand.vmem [shape: f32[2,8,256], index: 0, kind: input, shape index: {}]   ;;  %s1834_s1 = inlined_call_operand.vmem [shape: f32[16,72], index: 1, kind: input, shape index: {}]   ;;  %s1835_s2 = inlined_call_operand.vmem [shape: f32[16,1], index: 2, kind: input, shape index: {}]   ;;  %s1836_s3 = inlined_call_operand.vmem [shape: f32[16,1], index: 3, kind: input, shape index: {}]   ;;  %s1837_s4 = inlined_call_operand.vmem [shape: f32[8,144], index: 4, kind: input, shape index: {}]   ;;  %s1838_s5 = inlined_call_operand.vmem [shape: f32[8,1], index: 5, kind: input, shape index: {}]   ;;  %s1839_s6 = inlined_call_operand.vmem [shape: f32[2,256], index: 6, kind: input, shape index: {}]   ;;  %s1840_s7 = inlined_call_operand.<no memory space> [shape: f32[1,1], index: 7, kind: input, shape index: {}]   ;;  %s1841_s8 = inlined_call_operand.<no memory space> [shape: f32[1,1], index: 8, kind: input, shape index: {}]   ;;  %s1842_s9 = inlined_call_operand.vmem [shape: f32[2,8,256], index: 9, kind: output, shape index: {}]  }
   0x1   :  { %14 = sst [smem:[#allocation4]] %s1840_s7 }
   0x2   :  { %15 = sst [smem:[#allocation5]] %s1841_s8 }
   0x3 LB: > { %s1213_s14 = sadd.s32 4294967295, %s1420_s13   ;;  %p1217_p0 = scmp.ge.s32.totalorder %s1420_s13, 1  ;;  %s1420_s13 = sphi %s1488_s13, %s21_s13  }
   0x4   : > { %p289_p1 = scmp.lt.s32.totalorder %s1420_s13, 3 }
   0x6   : > { %p290_p2 = pnand %p1217_p0, %p289_p1 }
   0x7   : > { %s1422_s17 = smov (!%p290_p2), 17   ;;  %s1423_s18 = smov (!%p290_p2), 1  }
   0x8   : > { %293 = sbr.rel (%p290_p2) target bundleno = 739 (0x2e3), region = 56  ;;  %s1424_s19 = smov (!%p290_p2), 15  }
   0x9   : > { %s1425_s20 = smov (!%p290_p2), 127   ;;  %s1426_s21 = smov (!%p290_p2), 113  }
   0xa   : > { %s1427_s22 = smov (!%p290_p2), 111   ;;  %p325_p3 = scmp.lt.s32.totalorder (!%p290_p2), %s1213_s14, 1 }
   0xb   : > { %s1428_s27 = smov (!%p290_p2), 112   ;;  %s1430_s28 = smov (!%p290_p2), 16  }
   0xd   : > { %v1222_v0 = vld [vmem:[%s1839_s6 + $0x1] ss:$2 sm:$0x3]  ;;  %v335_v2 = vld [vmem:[%s1839_s6] ss:$2 sm:$0x3] }
   0xe   : > { %v403_v1 = vperm.slane %v1222_v0, 0  ;;  %v350_v3 = vperm.slane %v335_v2, 0  ;;  %v404_v4 = vperm.slane %v1222_v0, 1  ;;  %v351_v5 = vperm.slane %v335_v2, 1  ;;  %s1844_s14 = smov (!%p325_p3, %s1213_s14), 1  ;;  %v595_v56 = vld [vmem:[%s1835_s2 + $0x8] sm:$0xff] }
   0xf   : > { %s1231_s23 = sshll.u32 %s1844_s14, 4  ;;  %v1429_v9 = vmov 0.0   ;;  %vm426_vm0 = vcmask 121856   ;;  %vm373_vm1 = vcmask 138240   ;;  %vm409_vm2 = vcmask 924672   ;;  %v663_v62 = vld [vmem:[%s1836_s3] sm:$0xff] }
  0x10   : > { %548 = vrot.lane.b32.xlu0 %v403_v1, %s1422_s17  ;;  %471 = vrot.lane.b32.xlu2 %v403_v1, %s1423_s18  ;;  %s329_s26 = scalar_lea.vmem %s1833_s0, %s1231_s23  ;;  %vm440_vm3 = vcmask 1039360   ;;  %vm457_vm4 = vcmask 7168   ;;  %vm356_vm5 = vcmask 908288   ;;  %v1431_v58 = vmov 0   ;;  %s334_s10 = scalar_lea.vmem %s1842_s9, %s1231_s23 }
  0x11   : > { %500 = vrot.lane.b32.xlu1 %v350_v3, %s1424_s19  ;;  %v1526_v6 = vld [vmem:[%s329_s26] sm:$0xff]  ;;  %v1528_v7 = vld [vmem:[%s329_s26 + $0x8] sm:$0xff]  ;;  %1293 = vset.pattern.permute.xlu0 %v1431_v58  ;;  %vm538_vm6 = vcmask 916480   ;;  %vm392_vm7 = vcmask 130048   ;;  %vm606_vm8 = vcmask 588800  }
  0x12   : > { %v1251_v8 = vpack.i.bf16 %v1528_v7, %v1526_v6  ;;  %v1271_v51 = vpack.i.bf16 %v1526_v6, %v1429_v9  ;;  %1291 = vset.pattern.permute.xlu1 %v1431_v58  ;;  %1292 = vset.pattern.permute.xlu2 %v1431_v58 }
  0x18   : > { %550 = vrot.lane.b32.xlu0 %v404_v4, %s1422_s17  ;;  %473 = vrot.lane.b32.xlu2 %v404_v4, %s1423_s18 }
  0x19   : > { %502 = vrot.lane.b32.xlu1 %v351_v5, %s1424_s19 }
  0x20   : > { %436 = vrot.lane.b32.xlu0 %v350_v3, %s1425_s20  ;;  %405 = vrot.lane.b32.xlu2 %v403_v1, %s1426_s21 }
  0x21   : > { %438 = vrot.lane.b32.xlu1 %v351_v5, %s1425_s20 }
  0x28   : > { %407 = vrot.lane.b32.xlu0 %v404_v4, %s1426_s21  ;;  %354 = vrot.lane.b32.xlu2 %v351_v5, %s1427_s22 }
  0x29   : > { %352 = vrot.lane.b32.xlu1 %v350_v3, %s1427_s22 }
  0x30   : > { %1252 = vrot.lane.b32.xlu2 %v1251_v8, %s1428_s27  ;;  %536 = vrot.lane.b32.xlu0 %v1429_v9, %s1428_s27 }
  0x6a   : > { %v1539_v12 = vpop.permute.xlu2 %471 }
  0x6b   : > { %v479_v41 = vmul.f32 %v1539_v12, %v1526_v6 }
  0x72   : > { %v474_v17 = vpop.permute.xlu2 %473 }
  0x73   : > { %v1549_v18 = vmul.f32 0.0, %v474_v17  ;;  %v1588_v35 = vsel %vm457_vm4, %v1539_v12, %v474_v17  ;;  %v664_v17 = vld [vmem:[%s1836_s3 + $0x8] sm:$0xff] }
  0x74   : > { %v480_v42 = vmul.f32 %v1588_v35, %v1528_v7 }
  0x76   : > { %v1266_v47 = vpack.i.bf16 %v480_v42, %v479_v41 }
  0x7a   : > { %v406_v26 = vpop.permute.xlu2 %405 }
  0x7b   : > { %v1592_v36 = vmul.f32 0.0, %v406_v26 }
  0x82   : > { %v1535_v10 = vpop.permute.xlu0 %548  ;;  %v1606_v44 = vpop.permute.xlu2 %354 }
  0x83   : > { %v1537_v11 = vpop.permute.xlu1 %500  ;;  %v556_v28 = vmul.f32 %v1535_v10, %v1526_v6  ;;  %v363_v52 = vmul.f32 %v1606_v44, %v1528_v7 }
  0x84   : > { %v508_v27 = vmul.f32 %v1537_v11, %v1526_v6 }
  0x8a   : > { %v551_v13 = vpop.permute.xlu0 %550  ;;  %v1253_v53 = vpop.permute.xlu2 %1252 }
  0x8b   : > { %v1541_v14 = vmul.f32 0.0, %v551_v13  ;;  %v503_v15 = vpop.permute.xlu1 %502  ;;  %v1561_v23 = vsel %vm373_vm1, %v1535_v10, %v551_v13  ;;  %v1255_v1 = vunpack.i.h.bf16 %v1253_v53  ;;  %v1254_v2 = vunpack.i.l.bf16 %v1253_v53 }
  0x8c   : > { %v1543_v16 = vmul.f32 0.0, %v503_v15  ;;  %v1555_v21 = vsel %vm426_vm0, %v1537_v11, %v503_v15  ;;  %v557_v25 = vmul.f32 %v1561_v23, %v1528_v7 }
  0x8d   : > { %566 = vrot.lane.b32.xlu1 %v1541_v14, %s1427_s22  ;;  %v509_v24 = vmul.f32 %v1555_v21, %v1528_v7 }
  0x8e   : > { %518 = vrot.lane.b32.xlu2 %v1543_v16, %s1426_s21  ;;  %v1256_v34 = vpack.i.bf16 %v557_v25, %v556_v28 }
  0x8f   : > { %v1261_v31 = vpack.i.bf16 %v509_v24, %v508_v27  ;;  %v539_v24 = vsel %vm538_vm6, %v1254_v2, %v1255_v1 }
  0x92   : > { %v437_v19 = vpop.permute.xlu0 %436 }
  0x93   : > { %v1551_v20 = vpop.permute.xlu1 %438  ;;  %v1597_v38 = vmul.f32 0.0, %v437_v19 }
  0x94   : > { %v447_v22 = vmul.f32 %v1551_v20, %v1528_v7  ;;  %v1584_v33 = vsel %vm440_vm3, %v437_v19, %v1551_v20  ;;  %v594_v19 = vld [vmem:[%s1835_s2] sm:$0xff] }
  0x95   : > { %489 = vrot.lane.b32.xlu1 %v1549_v18, %s1425_s20  ;;  %v446_v39 = vmul.f32 %v1584_v33, %v1526_v6 }
  0x96   : > { %455 = vrot.lane.b32.xlu0 %v447_v22, %s1423_s18 }
  0x97   : > { %v1276_v46 = vpack.i.bf16 %v446_v39, %v1597_v38 }
  0x9a   : > { %v1574_v29 = vpop.permute.xlu0 %407 }
  0x9b   : > { %v416_v30 = vmul.f32 %v1574_v29, %v1528_v7  ;;  %v1580_v32 = vsel %vm409_vm2, %v406_v26, %v1574_v29  ;;  %v353_v40 = vpop.permute.xlu1 %352 }
  0x9c   : > { %v415_v37 = vmul.f32 %v1580_v32, %v1526_v6  ;;  %v1610_v45 = vsel %vm356_vm5, %v353_v40, %v1606_v44  ;;  %v1615_v48 = vmul.f32 0.0, %v353_v40 }
  0x9d   : > { %424 = vrot.lane.b32.xlu2 %v416_v30, %s1424_s19  ;;  %1262 = vrot.lane.b32.xlu1 %v1261_v31, %s1426_s21  ;;  %v362_v49 = vmul.f32 %v1610_v45, %v1526_v6 }
  0x9e   : > { %1257 = vrot.lane.b32.xlu0 %v1256_v34, %s1427_s22  ;;  %v1281_v43 = vpack.i.bf16 %v415_v37, %v1592_v36 }
  0x9f   : > { %v1286_v50 = vpack.i.bf16 %v362_v49, %v1615_v48 }
  0xa2   : > { %v537_v54 = vpop.permute.xlu0 %536 }
  0xa3   : > { %v540_v25 = vsel %vm538_vm6, %v1255_v1, %v537_v54 }
  0xa5   : > { %1277 = vrot.lane.b32.xlu2 %v1276_v46, %s1423_s18  ;;  %1282 = vrot.lane.b32.xlu1 %v1281_v43, %s1424_s19 }
  0xa6   : > { %1267 = vrot.lane.b32.xlu0 %v1266_v47, %s1425_s20 }
  0xad   : > { %390 = vrot.lane.b32.xlu1 %v1528_v7, %s1430_s28  ;;  %1287 = vrot.lane.b32.xlu2 %v1286_v50, %s1422_s17 }
  0xae   : > { %1272 = vrot.lane.b32.xlu0 %v1271_v51, %s1430_s28 }
  0xb5   : > { %603 = vperm.xlu1 %1291, %v595_v56   ;;  %598 = vperm.xlu2 %1292, %v594_v19  }
  0xb6   : > { %371 = vrot.lane.b32.xlu0 %v363_v52, %s1422_s17 }
  0xbd   : > { %667 = vperm.xlu1 %1291, %v663_v62  }
  0xbe   : > { %672 = vperm.xlu0 %1293, %v664_v17  }
  0xe8   : > { %v519_v57 = vpop.permute.xlu2 %518 }
  0xf7   : > { %v425_v61 = vpop.permute.xlu2 %424 }
  0xff   : > { %v567_v55 = vpop.permute.xlu1 %566  ;;  %v1278_v22 = vpop.permute.xlu2 %1277 }
 0x100   : > { %v1280_v37 = vunpack.i.h.bf16 %v1278_v22  ;;  %v1279_v39 = vunpack.i.l.bf16 %v1278_v22 }
 0x102   : > { %v458_v47 = vsel %vm457_vm4, %v1279_v39, %v1280_v37 }
 0x107   : > { %v490_v59 = vpop.permute.xlu1 %489  ;;  %v1288_v43 = vpop.permute.xlu2 %1287 }
 0x108   : > { %v456_v60 = vpop.permute.xlu0 %455  ;;  %v1290_v51 = vunpack.i.h.bf16 %v1288_v43  ;;  %v1289_v54 = vunpack.i.l.bf16 %v1288_v43 }
 0x109   : > { %v459_v49 = vsel %vm457_vm4, %v1280_v37, %v456_v60  ;;  %v574_v60 = vld [vmem:[%s1834_s1] sm:$0xff] }
 0x10a   : > { %v374_v62 = vsel %vm373_vm1, %v1289_v54, %v1290_v51 }
 0x10f   : > { %v1263_v63 = vpop.permute.xlu1 %1262  ;;  %v599_v2 = vpop.permute.xlu2 %598 }
 0x110   : > { %v1258_v0 = vpop.permute.xlu0 %1257  ;;  %v1265_v5 = vunpack.i.h.bf16 %v1263_v63  ;;  %v1264_v8 = vunpack.i.l.bf16 %v1263_v63 }
 0x111   : > { %v1260_v3 = vunpack.i.h.bf16 %v1258_v0  ;;  %v1259_v4 = vunpack.i.l.bf16 %v1258_v0  ;;  %v575_v0 = vld [vmem:[%s1834_s1 + $0x8] sm:$0xff] }
 0x112   : > { %v520_v26 = vsel %vm409_vm2, %v1264_v8, %v1265_v5  ;;  %v521_v27 = vsel %vm409_vm2, %v1265_v5, %v519_v57 }
 0x113   : > { %v568_v13 = vsel %vm356_vm5, %v1259_v4, %v1260_v3  ;;  %v569_v15 = vsel %vm356_vm5, %v1260_v3, %v567_v55 }
 0x114   : > { %620 = vmatpush.msra.mxu0 %v568_v13  ;;  %643 = vmatpush.msra.mxu1 %v569_v15 }
 0x116   : > { %621 = vmatpush.msra.mxu0 %v539_v24  ;;  %644 = vmatpush.msra.mxu1 %v540_v25 }
 0x117   : > { %v1283_v30 = vpop.permute.xlu1 %1282 }
 0x118   : > { %622 = vmatpush.msra.mxu0 %v520_v26  ;;  %645 = vmatpush.msra.mxu1 %v521_v27  ;;  %v1268_v28 = vpop.permute.xlu0 %1267  ;;  %v1284_v40 = vunpack.i.l.bf16 %v1283_v30  ;;  %v1285_v46 = vunpack.i.h.bf16 %v1283_v30 }
 0x119   : > { %v1270_v31 = vunpack.i.h.bf16 %v1268_v28  ;;  %v1269_v34 = vunpack.i.l.bf16 %v1268_v28 }
 0x11a   : > { %v427_v50 = vsel %vm426_vm0, %v1284_v40, %v1285_v46  ;;  %v428_v57 = vsel %vm426_vm0, %v1285_v46, %v425_v61 }
 0x11b   : > { %v491_v41 = vsel %vm440_vm3, %v1269_v34, %v1270_v31  ;;  %v492_v42 = vsel %vm440_vm3, %v1270_v31, %v490_v59 }
 0x11c   : > { %623 = vmatpush.msra.mxu0 %v491_v41  ;;  %646 = vmatpush.msra.mxu1 %v492_v42 }
 0x11e   : > { %624 = vmatpush.msra.mxu0 %v1526_v6  ;;  %647 = vmatpush.msra.mxu1 %v1528_v7 }
 0x11f   : > { %v391_v53 = vpop.permute.xlu1 %390 }
 0x120   : > { %v1273_v52 = vpop.permute.xlu0 %1272  ;;  %625 = vmatpush.msra.mxu0 %v458_v47  ;;  %648 = vmatpush.msra.mxu1 %v459_v49 }
 0x121   : > { %v1275_v55 = vunpack.i.h.bf16 %v1273_v52  ;;  %v1274_v56 = vunpack.i.l.bf16 %v1273_v52 }
 0x122   : > { %626 = vmatpush.msra.mxu0 %v427_v50  ;;  %649 = vmatpush.msra.mxu1 %v428_v57 }
 0x123   : > { %v393_v58 = vsel %vm392_vm7, %v1274_v56, %v1275_v55  ;;  %v394_v59 = vsel %vm392_vm7, %v1275_v55, %v391_v53 }
 0x124   : > { %627 = vmatpush.msra.mxu0 %v393_v58  ;;  %650 = vmatpush.msra.mxu1 %v394_v59 }
 0x126   : > { %628 = vmatpush.msra.mxu0 %v374_v62 }
 0x127   : > { %1223 = vmatmul.msk.f32.vlgmr.msra.gmra.mxu0 %vm606_vm8, %v574_v60  ;;  %v604_v1 = vpop.permute.xlu1 %603 }
 0x128   : > { %v372_v63 = vpop.permute.xlu0 %371 }
 0x129   : > { %v375_v61 = vsel %vm373_vm1, %v1290_v51, %v372_v63 }
 0x12a   : > { %651 = vmatpush.msra.mxu1 %v375_v61 }
 0x12b   : > { %1225 = vmatmul.msk.f32.vlgmr.msra.gmra.mxu1 %vm606_vm8, %v574_v60 }
 0x12f   : > { %1224 = vmatmul.msk.f32.gmra.mxu0 %vm606_vm8, %v575_v0  ;;  %v668_v5 = vpop.permute.xlu1 %667 }
 0x130   : > { %v673_v25 = vpop.permute.xlu0 %672 }
 0x133   : > { %1226 = vmatmul.msk.f32.gmra.mxu1 %vm606_vm8, %v575_v0 }
 0x1a4   : > { %v630_v3 = vpop.f32.mrf.mxu0 }
 0x1a5   : > { %v631_v4 = vadd.f32 %v630_v3, %v599_v2 }
 0x1a7   : > { %vm659_vm9 = vcmp.gt.f32.partialorder %v631_v4, 0.0  ;;  %v675_v8 = vmul.f32 %v668_v5, %v631_v4 }
 0x1a8   : > { %v653_v13 = vpop.f32.mrf.mxu1 }
 0x1a9   : > { %v1666_v15 = vsel %vm659_vm9, %v631_v4, %v675_v8  ;;  %v654_v17 = vadd.f32 %v653_v13, %v599_v2 }
 0x1aa   : > { %v1294_v19 = vpack.i.bf16 %v1666_v15, %v1429_v9  ;;  %v905_v30 = vmul.f32 %v1666_v15, %v1537_v11  ;;  %v814_v59 = vmul.f32 %v1666_v15, %v1584_v33  ;;  %v983_v4 = vmul.f32 %v1666_v15, %v1535_v10 }
 0x1ab   : > { %vm660_vm10 = vcmp.gt.f32.partialorder %v654_v17, 0.0  ;;  %v676_v22 = vmul.f32 %v668_v5, %v654_v17 }
 0x1ac   : > { %v633_v24 = vpop.f32.mrf.mxu0  ;;  %1295 = vrot.lane.b32.xlu1 %v1294_v19, %s1428_s27  ;;  %v1304_v41 = vpack.i.bf16 %v905_v30, %v1543_v16 }
 0x1ad   : > { %v1671_v26 = vsel %vm660_vm10, %v654_v17, %v676_v22  ;;  %v634_v27 = vadd.f32 %v633_v24, %v604_v1  ;;  %v694_v17 = vmul.f32 %v1666_v15, %v1610_v45 }
 0x1ae   : > { %v1299_v28 = vpack.i.bf16 0.0, %v1671_v26  ;;  %v906_v42 = vmul.f32 %v1671_v26, %v1555_v21  ;;  %v864_v53 = vmul.f32 %v1671_v26, %v1588_v35  ;;  %v815_v58 = vmul.f32 %v1671_v26, %v1551_v20 }
 0x1af   : > { %vm661_vm11 = vcmp.gt.f32.partialorder %v634_v27, 0.0  ;;  %v677_v31 = vmul.f32 %v673_v25, %v634_v27  ;;  %v773_v61 = vmul.f32 %v1671_v26, %v1574_v29  ;;  %v695_v13 = vmul.f32 %v1671_v26, %v1606_v44 }
 0x1b0   : > { %v656_v34 = vpop.f32.mrf.mxu1  ;;  %1300 = vrot.lane.b32.xlu2 %v1299_v28, %s1428_s27  ;;  %v1309_v47 = vpack.i.bf16 %v1543_v16, %v906_v42  ;;  %v1319_v16 = vpack.i.bf16 %v1549_v18, %v864_v53  ;;  %v1329_v60 = vpack.i.bf16 %v815_v58, %v814_v59  ;;  %v984_v22 = vmul.f32 %v1671_v26, %v1561_v23 }
 0x1b1   : > { %v1677_v37 = vsel %vm661_vm11, %v634_v27, %v677_v31  ;;  %v657_v39 = vadd.f32 %v656_v34, %v604_v1  ;;  %v1344_v19 = vpack.i.bf16 %v695_v13, %v694_v17 }
 0x1b2   : > { %v1349_v40 = vpack.i.bf16 %v1677_v37, %v1429_v9  ;;  %v863_v9 = vmul.f32 %v1666_v15, %v1539_v12  ;;  %v908_v50 = vmul.f32 %v1677_v37, %v1537_v11  ;;  %v866_v11 = vmul.f32 %v1677_v37, %v1539_v12 }
 0x1b3   : > { %vm662_vm12 = vcmp.gt.f32.partialorder %v657_v39, 0.0  ;;  %v678_v43 = vmul.f32 %v673_v25, %v657_v39  ;;  %v775_v62 = vmul.f32 %v1677_v37, %v1580_v32  ;;  %v697_v1 = vmul.f32 %v1677_v37, %v1610_v45 }
 0x1b4   : > { %1350 = vrot.lane.b32.xlu0 %v1349_v40, %s1430_s28  ;;  %1305 = vrot.lane.b32.xlu1 %v1304_v41, %s1426_s21  ;;  %v1314_v52 = vpack.i.bf16 %v863_v9, %v1549_v18  ;;  %v817_v18 = vmul.f32 %v1677_v37, %v1584_v33  ;;  %v772_v33 = vmul.f32 %v1666_v15, %v1580_v32 }
 0x1b5   : > { %v1686_v46 = vsel %vm662_vm12, %v657_v39, %v678_v43  ;;  %v1339_v32 = vpack.i.bf16 %v1671_v26, %v1666_v15  ;;  %v986_v5 = vmul.f32 %v1677_v37, %v1535_v10  ;;  %v1057_v10 = vld [vmem:[%s1838_s5] sm:$0xff] }
 0x1b6   : > { %v909_v49 = vmul.f32 %v1686_v46, %v1555_v21  ;;  %v867_v21 = vmul.f32 %v1686_v46, %v1588_v35  ;;  %v1354_v55 = vpack.i.bf16 0.0, %v1686_v46  ;;  %v1324_v56 = vpack.i.bf16 %v1686_v46, %v1677_v37 }
 0x1b7   : > { %v818_v35 = vmul.f32 %v1686_v46, %v1551_v20  ;;  %v1369_v12 = vpack.i.bf16 %v817_v18, %v1597_v38  ;;  %v776_v63 = vmul.f32 %v1686_v46, %v1574_v29  ;;  %v1334_v0 = vpack.i.bf16 %v773_v61, %v772_v33 }
 0x1b8   : > { %1310 = vrot.lane.b32.xlu2 %v1309_v47, %s1426_s21  ;;  %v1359_v51 = vpack.i.bf16 %v909_v49, %v908_v50  ;;  %v1364_v54 = vpack.i.bf16 %v867_v21, %v866_v11  ;;  %v698_v2 = vmul.f32 %v1686_v46, %v1606_v44  ;;  %v987_v3 = vmul.f32 %v1686_v46, %v1561_v23 }
 0x1b9   : > { %v1374_v57 = vpack.i.bf16 %v1597_v38, %v818_v35  ;;  %v1379_v38 = vpack.i.bf16 %v775_v62, %v1592_v36  ;;  %v1384_v20 = vpack.i.bf16 %v1592_v36, %v776_v63  ;;  %v1389_v36 = vpack.i.bf16 %v697_v1, %v1615_v48 }
 0x1ba   : > { %v1394_v29 = vpack.i.bf16 %v1615_v48, %v698_v2  ;;  %v1399_v8 = vpack.i.bf16 %v987_v3, %v986_v5  ;;  %v1404_v48 = vpack.i.bf16 %v983_v4, %v1541_v14  ;;  %v1409_v44 = vpack.i.bf16 %v1541_v14, %v984_v22 }
 0x1bc   : > { %1360 = vrot.lane.b32.xlu0 %v1359_v51, %s1426_s21  ;;  %1315 = vrot.lane.b32.xlu1 %v1314_v52, %s1425_s20 }
 0x1c0   : > { %1320 = vrot.lane.b32.xlu2 %v1319_v16, %s1425_s20 }
 0x1c4   : > { %1365 = vrot.lane.b32.xlu0 %v1364_v54, %s1425_s20  ;;  %1355 = vrot.lane.b32.xlu1 %v1354_v55, %s1430_s28 }
 0x1c8   : > { %1325 = vrot.lane.b32.xlu2 %v1324_v56, %s1428_s27  ;;  %s1146_s27 = sld [smem:[#allocation4]] }
 0x1cc   : > { %1370 = vrot.lane.b32.xlu0 %v1369_v12, %s1423_s18  ;;  %1375 = vrot.lane.b32.xlu1 %v1374_v57, %s1423_s18 }
 0x1d0   : > { %1330 = vrot.lane.b32.xlu2 %v1329_v60, %s1423_s18 }
 0x1d4   : > { %1380 = vrot.lane.b32.xlu0 %v1379_v38, %s1424_s19  ;;  %1385 = vrot.lane.b32.xlu1 %v1384_v20, %s1424_s19 }
 0x1d8   : > { %1335 = vrot.lane.b32.xlu2 %v1334_v0, %s1424_s19 }
 0x1dc   : > { %1390 = vrot.lane.b32.xlu0 %v1389_v36, %s1422_s17  ;;  %1395 = vrot.lane.b32.xlu1 %v1394_v29, %s1422_s17 }
 0x1e0   : > { %1340 = vrot.lane.b32.xlu2 %v1339_v32, %s1430_s28  ;;  %s1150_s28 = sld [smem:[#allocation5]] }
 0x1e4   : > { %1400 = vrot.lane.b32.xlu0 %v1399_v8, %s1427_s22  ;;  %1405 = vrot.lane.b32.xlu1 %v1404_v48, %s1427_s22 }
 0x1e8   : > { %1345 = vrot.lane.b32.xlu2 %v1344_v19, %s1422_s17 }
 0x1ec   : > { %1060 = vperm.xlu0 %1293, %v1057_v10  }
 0x1f0   : > { %1410 = vrot.lane.b32.xlu2 %v1409_v44, %s1427_s22 }
 0x20a   : > { %v1301_v24 = vpop.permute.xlu2 %1300 }
 0x20b   : > { %v1303_v45 = vunpack.i.h.bf16 %v1301_v24  ;;  %v1302_v30 = vunpack.i.l.bf16 %v1301_v24 }
 0x20d   : > { %v966_v49 = vsel %vm538_vm6, %v1302_v30, %v1303_v45 }
 0x212   : > { %v1311_v25 = vpop.permute.xlu2 %1310 }
 0x213   : > { %v1313_v50 = vunpack.i.h.bf16 %v1311_v25  ;;  %v1312_v51 = vunpack.i.l.bf16 %v1311_v25 }
 0x215   : > { %v930_v35 = vsel %vm409_vm2, %v1312_v51, %v1313_v50 }
 0x21a   : > { %v1321_v27 = vpop.permute.xlu2 %1320 }
 0x21b   : > { %v1323_v57 = vunpack.i.h.bf16 %v1321_v27  ;;  %v1322_v58 = vunpack.i.l.bf16 %v1321_v27 }
 0x21d   : > { %v888_v1 = vsel %vm440_vm3, %v1322_v58, %v1323_v57 }
 0x21e   : > { %v1296_v28 = vpop.permute.xlu1 %1295 }
 0x21f   : > { %v1298_v34 = vunpack.i.h.bf16 %v1296_v28  ;;  %v1297_v39 = vunpack.i.l.bf16 %v1296_v28 }
 0x221   : > { %v965_v47 = vsel %vm538_vm6, %v1298_v34, %v1302_v30 }
 0x222   : > { %v1326_v31 = vpop.permute.xlu2 %1325 }
 0x223   : > { %v1328_v40 = vunpack.i.h.bf16 %v1326_v31  ;;  %v1327_v41 = vunpack.i.l.bf16 %v1326_v31 }
 0x225   : > { %v967_v42 = vsel %vm538_vm6, %v1327_v41, %v1328_v40  ;;  %v968_v23 = vsel %vm538_vm6, %v1328_v40, %v1297_v39 }
 0x226   : > { %v1773_v43 = vpop.permute.xlu0 %1350  ;;  %1066 = vmatpush.msra.mxu2 %v967_v42  ;;  %1106 = vmatpush.msra.mxu3 %v968_v23  ;;  %v1306_v14 = vpop.permute.xlu1 %1305 }
 0x227   : > { %v1308_v16 = vunpack.i.h.bf16 %v1306_v14  ;;  %v1307_v21 = vunpack.i.l.bf16 %v1306_v14  ;;  %v1353_v27 = vunpack.i.h.bf16 %v1773_v43  ;;  %v1352_v28 = vunpack.i.l.bf16 %v1773_v43 }
 0x228   : > { %1067 = vmatpush.msra.mxu2 %v965_v47  ;;  %1107 = vmatpush.msra.mxu3 %v966_v49 }
 0x229   : > { %v929_v18 = vsel %vm409_vm2, %v1308_v16, %v1312_v51  ;;  %v755_v43 = vsel %vm392_vm7, %v1352_v28, %v1353_v27 }
 0x22a   : > { %v1331_v9 = vpop.permute.xlu2 %1330 }
 0x22b   : > { %v1333_v2 = vunpack.i.h.bf16 %v1331_v9  ;;  %v1332_v36 = vunpack.i.l.bf16 %v1331_v9 }
 0x22e   : > { %v1361_v52 = vpop.permute.xlu0 %1360  ;;  %v1316_v53 = vpop.permute.xlu1 %1315 }
 0x22f   : > { %v1363_v11 = vunpack.i.h.bf16 %v1361_v52  ;;  %v1362_v54 = vunpack.i.l.bf16 %v1361_v52  ;;  %v1318_v62 = vunpack.i.h.bf16 %v1316_v53  ;;  %v1317_v63 = vunpack.i.l.bf16 %v1316_v53 }
 0x231   : > { %v931_v55 = vsel %vm409_vm2, %v1362_v54, %v1363_v11  ;;  %v932_v56 = vsel %vm409_vm2, %v1363_v11, %v1307_v21  ;;  %v887_v0 = vsel %vm440_vm3, %v1318_v62, %v1322_v58 }
 0x232   : > { %1068 = vmatpush.msra.mxu2 %v931_v55  ;;  %1108 = vmatpush.msra.mxu3 %v932_v56  ;;  %v1336_v12 = vpop.permute.xlu2 %1335  ;;  %v1019_v56 = vld [vmem:[%s1837_s4] sm:$0xff] }
 0x233   : > { %v1337_v10 = vunpack.i.l.bf16 %v1336_v12 }
 0x234   : > { %1069 = vmatpush.msra.mxu2 %v929_v18  ;;  %1109 = vmatpush.msra.mxu3 %v930_v35 }
 0x236   : > { %v1366_v59 = vpop.permute.xlu0 %1365  ;;  %v1781_v60 = vpop.permute.xlu1 %1355 }
 0x237   : > { %v1368_v38 = vunpack.i.h.bf16 %v1366_v59  ;;  %v1367_v20 = vunpack.i.l.bf16 %v1366_v59  ;;  %v1357_v45 = vunpack.i.l.bf16 %v1781_v60  ;;  %v1358_v23 = vunpack.i.h.bf16 %v1781_v60 }
 0x239   : > { %v889_v61 = vsel %vm440_vm3, %v1367_v20, %v1368_v38  ;;  %v890_v33 = vsel %vm440_vm3, %v1368_v38, %v1317_v63  ;;  %v756_v14 = vsel %vm392_vm7, %v1353_v27, %v1357_v45 }
 0x23a   : > { %1070 = vmatpush.msra.mxu2 %v889_v61  ;;  %1110 = vmatpush.msra.mxu3 %v890_v33  ;;  %v1341_v3 = vpop.permute.xlu2 %1340 }
 0x23b   : > { %v1343_v39 = vunpack.i.h.bf16 %v1341_v3  ;;  %v1342_v40 = vunpack.i.l.bf16 %v1341_v3  ;;  %v1147_v3 = vstv %s1146_s27 }
 0x23c   : > { %1071 = vmatpush.msra.mxu2 %v887_v0  ;;  %1111 = vmatpush.msra.mxu3 %v888_v1  ;;  %v1020_v0 = vld [vmem:[%s1837_s4 + $0x8] sm:$0xff] }
 0x23d   : > { %v753_v51 = vsel %vm392_vm7, %v1358_v23, %v1342_v40  ;;  %v754_v52 = vsel %vm392_vm7, %v1342_v40, %v1343_v39 }
 0x23e   : > { %v1371_v29 = vpop.permute.xlu0 %1370  ;;  %v1376_v32 = vpop.permute.xlu1 %1375  ;;  %1072 = vmatpush.msra.mxu2 %v1677_v37  ;;  %1112 = vmatpush.msra.mxu3 %v1686_v46  ;;  %v838_v37 = vsel %vm457_vm4, %v1332_v36, %v1333_v2  ;;  %v1338_v46 = vunpack.i.h.bf16 %v1336_v12 }
 0x23f   : > { %v1373_v4 = vunpack.i.h.bf16 %v1371_v29  ;;  %v1372_v5 = vunpack.i.l.bf16 %v1371_v29  ;;  %v1378_v8 = vunpack.i.h.bf16 %v1376_v32  ;;  %v1377_v48 = vunpack.i.l.bf16 %v1376_v32 }
 0x240   : > { %1073 = vmatpush.msra.mxu2 %v1666_v15  ;;  %1113 = vmatpush.msra.mxu3 %v1671_v26  ;;  %v796_v42 = vsel %vm426_vm0, %v1337_v10, %v1338_v46  ;;  %v1149_v46 = vmul.f32 %v1147_v3, %v1528_v7 }
 0x241   : > { %v839_v13 = vsel %vm457_vm4, %v1372_v5, %v1373_v4  ;;  %v840_v17 = vsel %vm457_vm4, %v1373_v4, %v1377_v48  ;;  %v837_v19 = vsel %vm457_vm4, %v1378_v8, %v1332_v36  ;;  %v1151_v48 = vstv %s1150_s28 }
 0x242   : > { %1074 = vmatpush.msra.mxu2 %v839_v13  ;;  %1114 = vmatpush.msra.mxu3 %v840_v17  ;;  %v1346_v30 = vpop.permute.xlu2 %1345 }
 0x243   : > { %v1348_v47 = vunpack.i.h.bf16 %v1346_v30  ;;  %v1347_v49 = vunpack.i.l.bf16 %v1346_v30 }
 0x244   : > { %1075 = vmatpush.msra.mxu2 %v837_v19  ;;  %1115 = vmatpush.msra.mxu3 %v838_v37  ;;  %v1148_v19 = vmul.f32 %v1147_v3, %v1526_v6 }
 0x245   : > { %v718_v12 = vsel %vm373_vm1, %v1347_v49, %v1348_v47 }
 0x246   : > { %v1381_v22 = vpop.permute.xlu0 %1380  ;;  %v1386_v44 = vpop.permute.xlu1 %1385 }
 0x247   : > { %v1383_v24 = vunpack.i.h.bf16 %v1381_v22  ;;  %v1382_v15 = vunpack.i.l.bf16 %v1381_v22  ;;  %v1388_v25 = vunpack.i.h.bf16 %v1386_v44  ;;  %v1387_v26 = vunpack.i.l.bf16 %v1386_v44 }
 0x249   : > { %v797_v31 = vsel %vm426_vm0, %v1382_v15, %v1383_v24  ;;  %v798_v34 = vsel %vm426_vm0, %v1383_v24, %v1387_v26  ;;  %v795_v41 = vsel %vm426_vm0, %v1388_v25, %v1337_v10 }
 0x24a   : > { %1076 = vmatpush.msra.mxu2 %v797_v31  ;;  %1116 = vmatpush.msra.mxu3 %v798_v34  ;;  %v1411_v18 = vpop.permute.xlu2 %1410 }
 0x24b   : > { %v1413_v57 = vunpack.i.h.bf16 %v1411_v18  ;;  %v1412_v58 = vunpack.i.l.bf16 %v1411_v18 }
 0x24c   : > { %1077 = vmatpush.msra.mxu2 %v795_v41  ;;  %1117 = vmatpush.msra.mxu3 %v796_v42 }
 0x24d   : > { %v1008_v2 = vsel %vm356_vm5, %v1412_v58, %v1413_v57 }
 0x24e   : > { %v1391_v9 = vpop.permute.xlu0 %1390  ;;  %v1396_v50 = vpop.permute.xlu1 %1395  ;;  %1078 = vmatpush.msra.mxu2 %v755_v43  ;;  %1118 = vmatpush.msra.mxu3 %v756_v14 }
 0x24f   : > { %v1393_v53 = vunpack.i.h.bf16 %v1391_v9  ;;  %v1392_v16 = vunpack.i.l.bf16 %v1391_v9  ;;  %v1398_v21 = vunpack.i.h.bf16 %v1396_v50  ;;  %v1397_v11 = vunpack.i.l.bf16 %v1396_v50 }
 0x250   : > { %1079 = vmatpush.msra.mxu2 %v753_v51  ;;  %1119 = vmatpush.msra.mxu3 %v754_v52 }
 0x251   : > { %v719_v54 = vsel %vm373_vm1, %v1392_v16, %v1393_v53  ;;  %v720_v55 = vsel %vm373_vm1, %v1393_v53, %v1397_v11  ;;  %v717_v35 = vsel %vm373_vm1, %v1398_v21, %v1347_v49 }
 0x252   : > { %1080 = vmatpush.msra.mxu2 %v719_v54  ;;  %1120 = vmatpush.msra.mxu3 %v720_v55 }
 0x254   : > { %1081 = vmatpush.msra.mxu2 %v717_v35  ;;  %1121 = vmatpush.msra.mxu3 %v718_v12 }
 0x255   : > { %1082 = vmatmul.f32.vlgmr.msra.gmra.mxu2 %v1019_v56  ;;  %1122 = vmatmul.f32.vlgmr.msra.gmra.mxu3 %v1019_v56 }
 0x256   : > { %v1401_v59 = vpop.permute.xlu0 %1400  ;;  %v1406_v60 = vpop.permute.xlu1 %1405 }
 0x257   : > { %v1403_v62 = vunpack.i.h.bf16 %v1401_v59  ;;  %v1402_v63 = vunpack.i.l.bf16 %v1401_v59  ;;  %v1408_v38 = vunpack.i.h.bf16 %v1406_v60  ;;  %v1407_v20 = vunpack.i.l.bf16 %v1406_v60 }
 0x259   : > { %v1009_v61 = vsel %vm356_vm5, %v1402_v63, %v1403_v62  ;;  %v1010_v33 = vsel %vm356_vm5, %v1403_v62, %v1407_v20  ;;  %v1007_v1 = vsel %vm356_vm5, %v1408_v38, %v1412_v58 }
 0x25a   : > { %1100 = vmatpush.msrb.mxu1 %v1009_v61  ;;  %1140 = vmatpush.msrb.mxu0 %v1010_v33 }
 0x25c   : > { %1101 = vmatpush.msrb.mxu1 %v1007_v1  ;;  %1141 = vmatpush.msrb.mxu0 %v1008_v2 }
 0x25d   : > { %1227 = vmatmul.msk.f32.vlgmr.msrb.gmra.mxu1 %vm392_vm7, %v1020_v0  ;;  %1228 = vmatmul.msk.f32.vlgmr.msrb.gmra.mxu0 %vm392_vm7, %v1020_v0 }
 0x25e   : > { %v1061_v36 = vpop.permute.xlu0 %1060 }
 0x2d8   : > { %v1083_v29 = vpop.f32.mrf.mxu2  ;;  %v1123_v32 = vpop.f32.mrf.mxu3 }
 0x2d9   : > { %v1084_v4 = vadd.f32 %v1083_v29, %v1061_v36  ;;  %v1124_v5 = vadd.f32 %v1123_v32, %v1061_v36 }
 0x2da   : > { %v1103_v8 = vpop.f32.mrf.mxu1  ;;  %v1143_v13 = vpop.f32.mrf.mxu0 }
 0x2db   : > { %v1104_v17 = vadd.f32 %v1103_v8, %v1084_v4  ;;  %v1144_v37 = vadd.f32 %v1143_v13, %v1124_v5 }
 0x2dd   : > { %v1152_v10 = vmul.f32 %v1151_v48, %v1104_v17  ;;  %v1153_v22 = vmul.f32 %v1151_v48, %v1144_v37 }
 0x2df   : > { %v1154_v44 = vadd.f32 %v1152_v10, %v1148_v19  ;;  %v1155_v24 = vadd.f32 %v1153_v22, %v1149_v46 }
 0x2e1   : > { %1156 = vst [vmem:[%s334_s10] sm:$0xff] %v1154_v44 }
 0x2e2   : > { %1157 = vst [vmem:[%s334_s10 + $0x8] sm:$0xff] %v1155_v24 }
 0x2e3 PF: > { %s21_s13 = sadd.s32 1, %s1420_s13  }
 0x2e4   : > { %p18_p4 = scmp.ge.s32.totalorder %s21_s13, 4  }
 0x2e6   :  { %20 = sbr.rel (!%p18_p4) target bundleno = 3 (0x3), region = 87 }

</bundles_post_ra>
